<compile_context>
chip_gen: v6e
topology: v6e:2x2x1
jax: 0.10.0
libtpu: 0.0.40
codegen_flags: <defaults>
</compile_context>

<pallas_src>
import math

import jax
import jax.numpy as jnp
from jax import lax
from jax.experimental import pallas as pl
from jax.experimental.pallas import tpu as pltpu

# ----------------------------- configuration -----------------------------
B = 2                                    # batch
SPEC_CH, SPEC_MEL, SPEC_T = 1, 128, 16   # spectrogram input (B, 1, 128, T)
LAT_C, LAT_W = 4, 16                     # latent (B, C, 1, W)
VID_C, VID_F, VID_H, VID_W = 3, 4, 8, 8  # video (B, 3, F, H, W)
COND_DIM = 32                            # cond_stage.latent_dim
TEMB_DIM = 32                            # timestep embedding dim
HIDDEN = 64                              # synthetic UNet hidden width
TIMESTEPS = 1000
BETA_START, BETA_END = 1e-4, 2e-2
GUIDANCE_PROB = 0.2

D_SPEC = SPEC_CH * SPEC_MEL * SPEC_T     # 2048
D_LAT = LAT_C * LAT_W                    # 64
D_FRAME = VID_C * VID_H * VID_W          # 192
D_UNET_IN = D_LAT + TEMB_DIM + COND_DIM  # 128

B_PAD = 8                                # pad batch rows to a full f32 sublane tile

# ---- constants-slab row layout (all row blocks start at multiples of 8) ----
SLAB_LANES = D_FRAME                     # 192 (widest packed operand)
R_POOLV = 0                              # (B_PAD, 192)  mean-pooled video frames
R_WEFF  = R_POOLV + B_PAD                # (192, 32)     fused cond weight
R_BEFF  = R_WEFF + D_FRAME               # (1,   32)     fused cond bias
R_TEMB  = R_BEFF + 8                     # (B_PAD, 32)   timestep embedding
R_SA    = R_TEMB + B_PAD                 # (B_PAD, 1)    sqrt(alpha_bar_t)
R_SB    = R_SA + B_PAD                   # (B_PAD, 1)    sqrt(1 - alpha_bar_t)
R_ENCB  = R_SB + B_PAD                   # (1,   64)     encoder bias
R_EPS   = R_ENCB + 8                     # (B_PAD, 64)   diffusion noise
R_W1    = R_EPS + B_PAD                  # (128, 64)     UNet W1 (packed xt|temb|cond)
R_B1    = R_W1 + D_UNET_IN               # (1,   64)     UNet b1
R_W2    = R_B1 + 8                       # (64,  64)     UNet W2
R_B2    = R_W2 + HIDDEN                  # (1,   64)     UNet b2
SLAB_ROWS = R_B2 + 8                     # 456


# ------------------------------ fused kernel ------------------------------
def _fused_forward_kernel(keep_ref, spec_ref, encw_ref, slab_ref, loss_ref):
    sl = slab_ref

    # first_stage spec encoder: z0 = spec @ enc_w + enc_b          (B_PAD, D_LAT) f32
    z0 = jnp.dot(spec_ref[...], encw_ref[...], preferred_element_type=jnp.float32)
    z0 = z0 + sl[R_ENCB:R_ENCB + 1, 0:D_LAT]

    # q_sample: xt = sqrt(a_bar_t) * z0 + sqrt(1 - a_bar_t) * eps  (per-sample rows)
    sa = sl[R_SA:R_SA + B_PAD, 0:1]
    sb = sl[R_SB:R_SB + B_PAD, 0:1]
    eps = sl[R_EPS:R_EPS + B_PAD, 0:D_LAT]
    xt = sa * z0 + sb * eps

    # cond_stage(video) -> PE -> guidance dropout, pre-fused into one linear op:
    # cond = keep * (mean_f(video frames) @ W_eff + bias_eff)
    pooled_vid = sl[R_POOLV:R_POOLV + B_PAD, :]
    w_eff = sl[R_WEFF:R_WEFF + D_FRAME, 0:COND_DIM]
    b_eff = sl[R_BEFF:R_BEFF + 1, 0:COND_DIM]
    cond = jnp.dot(pooled_vid, w_eff, preferred_element_type=jnp.float32) + b_eff
    cond = cond * keep_ref[0]                       # whole-batch keep flag (SMEM scalar)

    temb = sl[R_TEMB:R_TEMB + B_PAD, 0:TEMB_DIM]

    # synthetic UNet eps predictor: block-matmul equivalent of
    # concat([xt, temb, cond]) @ W1 + b1, sliced from one packed W1 block (no lane concat).
    w1_x = sl[R_W1:R_W1 + D_LAT, 0:HIDDEN]
    w1_t = sl[R_W1 + D_LAT:R_W1 + D_LAT + TEMB_DIM, 0:HIDDEN]
    w1_c = sl[R_W1 + D_LAT + TEMB_DIM:R_W1 + D_UNET_IN, 0:HIDDEN]
    b1 = sl[R_B1:R_B1 + 1, 0:HIDDEN]
    h = (jnp.dot(xt, w1_x, preferred_element_type=jnp.float32)
         + jnp.dot(temb, w1_t, preferred_element_type=jnp.float32)
         + jnp.dot(cond, w1_c, preferred_element_type=jnp.float32)
         + b1)
    # TODO(synk): PyTorch nn.GELU default is the exact erf form; tanh approx kept here
    # for guaranteed TPU lowering of the stand-in UNet.
    h = jax.nn.gelu(h, approximate=True)

    w2 = sl[R_W2:R_W2 + HIDDEN, 0:D_LAT]
    b2 = sl[R_B2:R_B2 + 1, 0:D_LAT]
    eps_hat = jnp.dot(h, w2, preferred_element_type=jnp.float32) + b2

    # mse_loss(eps_hat, eps) over the real B rows only (rows >= B are batch padding).
    d = eps_hat - eps
    row = lax.broadcasted_iota(jnp.int32, d.shape, 0)
    d = jnp.where(row < B, d, 0.0)
    loss_ref[0, 0] = jnp.sum(d * d) * (1.0 / float(B * D_LAT))


def fused_forward(keep, spec_pad, enc_w, slab):
    # Single ungridded invocation: 3 VMEM input DMAs + 1 SMEM scalar, SMEM scalar out.
    # TODO(synk): add a leading "parallel" batch grid axis for v7x once the effective
    # batch is large enough to shard across its two TensorCores.
    loss = pl.pallas_call(
        _fused_forward_kernel,
        out_shape=jax.ShapeDtypeStruct((1, 1), jnp.float32),
        in_specs=[
            pl.BlockSpec(memory_space=pltpu.MemorySpace.SMEM),   # keep flag
            pl.BlockSpec(memory_space=pltpu.MemorySpace.VMEM),   # spec   (B_PAD, 2048)
            pl.BlockSpec(memory_space=pltpu.MemorySpace.VMEM),   # enc_w  (2048, 64)
            pl.BlockSpec(memory_space=pltpu.MemorySpace.VMEM),   # consts slab
        ],
        out_specs=pl.BlockSpec(memory_space=pltpu.MemorySpace.SMEM),
    )(keep, spec_pad, enc_w, slab)
    return loss[0, 0]


# ------------------------------ helpers (glue) -----------------------------
def make_buffers():
    betas = jnp.linspace(BETA_START, BETA_END, TIMESTEPS, dtype=jnp.float32)
    alphas_cumprod = jnp.cumprod(1.0 - betas)
    return {
        "alphas_cumprod": alphas_cumprod,
        "sqrt_alphas_cumprod": jnp.sqrt(alphas_cumprod),
        "sqrt_one_minus_alphas_cumprod": jnp.sqrt(1.0 - alphas_cumprod),
    }


def init_params(key):
    ks = jax.random.split(key, 5)
    scale = 0.02

    def w(k, shape):  # f32 weights (bit-closer to the f32 PyTorch reference)
        return scale * jax.random.normal(k, shape, jnp.float32)

    return {
        # first_stage spec_encoder: (B, 1, 128, T) -> (B, C*W)
        "enc_w": w(ks[0], (D_SPEC, D_LAT)),
        "enc_b": jnp.zeros((1, D_LAT), jnp.float32),
        # cond_stage (CAVP): per-frame projection -> COND_DIM
        "cavp_w": w(ks[1], (D_FRAME, COND_DIM)),
        "cavp_b": jnp.zeros((1, COND_DIM), jnp.float32),
        # CAVPVideoPE: sinusoidal PE + linear COND_DIM -> COND_DIM
        "pe_w": w(ks[2], (COND_DIM, COND_DIM)),
        "pe_b": jnp.zeros((1, COND_DIM), jnp.float32),
        # synthetic UNet MLP (eps predictor)
        "unet_w1": w(ks[3], (D_UNET_IN, HIDDEN)),
        "unet_b1": jnp.zeros((1, HIDDEN), jnp.float32),
        "unet_w2": w(ks[4], (HIDDEN, D_LAT)),
        "unet_b2": jnp.zeros((1, D_LAT), jnp.float32),
    }


def timestep_embedding(t, dim):
    half = dim // 2
    freqs = jnp.exp(-math.log(10000.0) * jnp.arange(half, dtype=jnp.float32) / half)
    args = t.astype(jnp.float32)[:, None] * freqs[None, :]
    return jnp.concatenate([jnp.sin(args), jnp.cos(args)], axis=-1)


def sinusoidal_pe(length, dim):
    half = dim // 2
    pos = jnp.arange(length, dtype=jnp.float32)[:, None]
    freqs = jnp.exp(-math.log(10000.0) * jnp.arange(half, dtype=jnp.float32) / half)
    args = pos * freqs[None, :]
    return jnp.concatenate([jnp.sin(args), jnp.cos(args)], axis=-1)


def _pad_rows(x, rows):
    return jnp.pad(x, ((0, rows - x.shape[0]), (0, 0)))


# ------------------------------ forward pass -------------------------------
def latent_diffusion_forward(params, buffers, x_spec, video, rng):
    """x_spec: (B, 1, 128, T) spectrogram; video: (B, 3, F, H, W) RGB."""
    k_t, k_eps, k_guid = jax.random.split(rng, 3)
    Bn = x_spec.shape[0]

    # ---- LatentDiffusion glue (tiny XLA work, fused under jit) ----
    spec_pad = _pad_rows(x_spec.reshape(Bn, D_SPEC).astype(jnp.float32), B_PAD)

    t = jax.random.randint(k_t, (Bn,), 0, TIMESTEPS)
    sa = buffers["sqrt_alphas_cumprod"][t][:, None]                    # (B, 1)
    sb = buffers["sqrt_one_minus_alphas_cumprod"][t][:, None]          # (B, 1)
    eps = jax.random.normal(k_eps, (Bn, D_LAT), jnp.float32)

    u = jax.random.uniform(k_guid, ())
    keep = jnp.where(u < GUIDANCE_PROB, 0.0, 1.0)                      # whole-batch draw
    keep = keep.reshape(1).astype(jnp.float32)                         # -> SMEM

    temb = timestep_embedding(t, TEMB_DIM)

    # cond_stage -> PE -> pooling, fused at trace time (all linear; keep is a scalar):
    #   pooled_cond = mean_f(frames) @ (cavp_w @ pe_w) + (cavp_b + mean_f pe) @ pe_w + pe_b
    # TODO(synk): real UNet cross-attends over per-frame cond tokens instead of pooling.
    vid_frames = jnp.transpose(video, (0, 2, 1, 3, 4)).reshape(Bn, VID_F, D_FRAME)
    pooled_vid = jnp.mean(vid_frames, axis=1).astype(jnp.float32)      # (B, 192)
    pe = sinusoidal_pe(VID_F, COND_DIM)                                # (F, 32)
    w_eff = params["cavp_w"] @ params["pe_w"]                          # (192, 32)
    bias_eff = ((params["cavp_b"] + jnp.mean(pe, axis=0, keepdims=True))
                @ params["pe_w"] + params["pe_b"])                     # (1, 32)

    # ---- pack all small operands into ONE lane-dense f32 slab (single DMA) ----
    slab = jnp.zeros((SLAB_ROWS, SLAB_LANES), jnp.float32)
    slab = slab.at[R_POOLV:R_POOLV + B_PAD, :].set(_pad_rows(pooled_vid, B_PAD))
    slab = slab.at[R_WEFF:R_WEFF + D_FRAME, 0:COND_DIM].set(w_eff)
    slab = slab.at[R_BEFF:R_BEFF + 1, 0:COND_DIM].set(bias_eff)
    slab = slab.at[R_TEMB:R_TEMB + B_PAD, 0:TEMB_DIM].set(_pad_rows(temb, B_PAD))
    slab = slab.at[R_SA:R_SA + B_PAD, 0:1].set(_pad_rows(sa, B_PAD))
    slab = slab.at[R_SB:R_SB + B_PAD, 0:1].set(_pad_rows(sb, B_PAD))
    slab = slab.at[R_ENCB:R_ENCB + 1, 0:D_LAT].set(params["enc_b"])
    slab = slab.at[R_EPS:R_EPS + B_PAD, 0:D_LAT].set(_pad_rows(eps, B_PAD))
    slab = slab.at[R_W1:R_W1 + D_UNET_IN, 0:HIDDEN].set(params["unet_w1"])
    slab = slab.at[R_B1:R_B1 + 1, 0:HIDDEN].set(params["unet_b1"])
    slab = slab.at[R_W2:R_W2 + HIDDEN, 0:D_LAT].set(params["unet_w2"])
    slab = slab.at[R_B2:R_B2 + 1, 0:D_LAT].set(params["unet_b2"])

    return fused_forward(keep, spec_pad, params["enc_w"], slab)


# ---------------------------------- main -----------------------------------
if __name__ == "__main__":
    key = jax.random.PRNGKey(0)
    k_param, k_spec, k_vid, k_fwd = jax.random.split(key, 4)

    params = init_params(k_param)
    buffers = make_buffers()

    x_spec = jax.random.normal(k_spec, (B, SPEC_CH, SPEC_MEL, SPEC_T), jnp.float32)
    video = jax.random.normal(k_vid, (B, VID_C, VID_F, VID_H, VID_W), jnp.float32)

    fwd = jax.jit(latent_diffusion_forward)
    loss = fwd(params, buffers, x_spec, video, k_fwd)
    jax.block_until_ready(loss)
    assert loss.shape == () and bool(jnp.isfinite(loss))
    print("KERNEL_OK")
</pallas_src>

<mosaic_0001>
module attributes {stable_mosaic.version = 11 : i64} {
  func.func @_fused_forward_kernel(%arg0: memref<1xf32, #tpu.memory_space<smem>>, %arg1: memref<8x2048xf32, #tpu.memory_space<vmem>>, %arg2: memref<2048x64xf32, #tpu.memory_space<vmem>>, %arg3: memref<456x192xf32, #tpu.memory_space<vmem>>, %arg4: memref<1x1xf32, #tpu.memory_space<smem>>) attributes {dimension_semantics = [], scalar_prefetch = 0 : i64, scratch_operands = 0 : i64, tpu.core_type = #tpu.core_type<tc>} {
    %c0 = arith.constant 0 : index
    %c0_0 = arith.constant 0 : index
    %0 = vector.load %arg1[%c0, %c0_0] : memref<8x2048xf32, #tpu.memory_space<vmem>>, vector<8x2048xf32>
    %c0_1 = arith.constant 0 : index
    %c0_2 = arith.constant 0 : index
    %1 = vector.load %arg2[%c0_1, %c0_2] : memref<2048x64xf32, #tpu.memory_space<vmem>>, vector<2048x64xf32>
    %cst = arith.constant dense<0.000000e+00> : vector<8x64xf32>
    %2 = tpu.matmul %0, %1, %cst {dimension_numbers = #tpu.dot_dimension_numbers<[1], [0], [0], [1], [0, 0, 1, 1], [], []>} : vector<8x2048xf32>, vector<2048x64xf32>, vector<8x64xf32> -> vector<8x64xf32>
    %c232 = arith.constant 232 : index
    %c0_3 = arith.constant 0 : index
    %3 = vector.load %arg3[%c232, %c0_3] : memref<456x192xf32, #tpu.memory_space<vmem>>, vector<1x64xf32>
    %4 = vector.broadcast %3 : vector<1x64xf32> to vector<8x64xf32>
    %5 = arith.addf %2, %4 : vector<8x64xf32>
    %c216 = arith.constant 216 : index
    %c0_4 = arith.constant 0 : index
    %6 = vector.load %arg3[%c216, %c0_4] : memref<456x192xf32, #tpu.memory_space<vmem>>, vector<8x1xf32>
    %c224 = arith.constant 224 : index
    %c0_5 = arith.constant 0 : index
    %7 = vector.load %arg3[%c224, %c0_5] : memref<456x192xf32, #tpu.memory_space<vmem>>, vector<8x1xf32>
    %c240 = arith.constant 240 : index
    %c0_6 = arith.constant 0 : index
    %8 = vector.load %arg3[%c240, %c0_6] : memref<456x192xf32, #tpu.memory_space<vmem>>, vector<8x64xf32>
    %9 = vector.broadcast %6 : vector<8x1xf32> to vector<8x64xf32>
    %10 = arith.mulf %9, %5 : vector<8x64xf32>
    %11 = vector.broadcast %7 : vector<8x1xf32> to vector<8x64xf32>
    %12 = arith.mulf %11, %8 : vector<8x64xf32>
    %13 = arith.addf %10, %12 : vector<8x64xf32>
    %c0_7 = arith.constant 0 : index
    %c0_8 = arith.constant 0 : index
    %14 = vector.load %arg3[%c0_7, %c0_8] : memref<456x192xf32, #tpu.memory_space<vmem>>, vector<8x192xf32>
    %c8 = arith.constant 8 : index
    %c0_9 = arith.constant 0 : index
    %15 = vector.load %arg3[%c8, %c0_9] : memref<456x192xf32, #tpu.memory_space<vmem>>, vector<192x32xf32>
    %c200 = arith.constant 200 : index
    %c0_10 = arith.constant 0 : index
    %16 = vector.load %arg3[%c200, %c0_10] : memref<456x192xf32, #tpu.memory_space<vmem>>, vector<1x32xf32>
    %cst_11 = arith.constant dense<0.000000e+00> : vector<8x32xf32>
    %17 = tpu.matmul %14, %15, %cst_11 {dimension_numbers = #tpu.dot_dimension_numbers<[1], [0], [0], [1], [0, 0, 1, 1], [], []>} : vector<8x192xf32>, vector<192x32xf32>, vector<8x32xf32> -> vector<8x32xf32>
    %18 = vector.broadcast %16 : vector<1x32xf32> to vector<8x32xf32>
    %19 = arith.addf %17, %18 : vector<8x32xf32>
    %c0_12 = arith.constant 0 : index
    %20 = memref.load %arg0[%c0_12] : memref<1xf32, #tpu.memory_space<smem>>
    %21 = vector.broadcast %20 : f32 to vector<8x32xf32>
    %22 = arith.mulf %19, %21 : vector<8x32xf32>
    %c208 = arith.constant 208 : index
    %c0_13 = arith.constant 0 : index
    %23 = vector.load %arg3[%c208, %c0_13] : memref<456x192xf32, #tpu.memory_space<vmem>>, vector<8x32xf32>
    %c248 = arith.constant 248 : index
    %c0_14 = arith.constant 0 : index
    %24 = vector.load %arg3[%c248, %c0_14] : memref<456x192xf32, #tpu.memory_space<vmem>>, vector<64x64xf32>
    %c312 = arith.constant 312 : index
    %c0_15 = arith.constant 0 : index
    %25 = vector.load %arg3[%c312, %c0_15] : memref<456x192xf32, #tpu.memory_space<vmem>>, vector<32x64xf32>
    %c344 = arith.constant 344 : index
    %c0_16 = arith.constant 0 : index
    %26 = vector.load %arg3[%c344, %c0_16] : memref<456x192xf32, #tpu.memory_space<vmem>>, vector<32x64xf32>
    %c376 = arith.constant 376 : index
    %c0_17 = arith.constant 0 : index
    %27 = vector.load %arg3[%c376, %c0_17] : memref<456x192xf32, #tpu.memory_space<vmem>>, vector<1x64xf32>
    %cst_18 = arith.constant dense<0.000000e+00> : vector<8x64xf32>
    %28 = tpu.matmul %13, %24, %cst_18 {dimension_numbers = #tpu.dot_dimension_numbers<[1], [0], [0], [1], [0, 0, 1, 1], [], []>} : vector<8x64xf32>, vector<64x64xf32>, vector<8x64xf32> -> vector<8x64xf32>
    %cst_19 = arith.constant dense<0.000000e+00> : vector<8x64xf32>
    %29 = tpu.matmul %23, %25, %cst_19 {dimension_numbers = #tpu.dot_dimension_numbers<[1], [0], [0], [1], [0, 0, 1, 1], [], []>} : vector<8x32xf32>, vector<32x64xf32>, vector<8x64xf32> -> vector<8x64xf32>
    %30 = arith.addf %28, %29 : vector<8x64xf32>
    %cst_20 = arith.constant dense<0.000000e+00> : vector<8x64xf32>
    %31 = tpu.matmul %22, %26, %cst_20 {dimension_numbers = #tpu.dot_dimension_numbers<[1], [0], [0], [1], [0, 0, 1, 1], [], []>} : vector<8x32xf32>, vector<32x64xf32>, vector<8x64xf32> -> vector<8x64xf32>
    %32 = arith.addf %30, %31 : vector<8x64xf32>
    %33 = vector.broadcast %27 : vector<1x64xf32> to vector<8x64xf32>
    %34 = arith.addf %32, %33 : vector<8x64xf32>
    %35 = arith.mulf %34, %34 : vector<8x64xf32>
    %36 = arith.mulf %34, %35 : vector<8x64xf32>
    %cst_21 = arith.constant 4.471500e-02 : f32
    %37 = vector.broadcast %cst_21 : f32 to vector<8x64xf32>
    %38 = arith.mulf %37, %36 : vector<8x64xf32>
    %39 = arith.addf %34, %38 : vector<8x64xf32>
    %cst_22 = arith.constant 0.797884583 : f32
    %40 = vector.broadcast %cst_22 : f32 to vector<8x64xf32>
    %41 = arith.mulf %40, %39 : vector<8x64xf32>
    %42 = math.tanh %41 : vector<8x64xf32>
    %cst_23 = arith.constant 1.000000e+00 : f32
    %43 = vector.broadcast %cst_23 : f32 to vector<8x64xf32>
    %44 = arith.addf %43, %42 : vector<8x64xf32>
    %cst_24 = arith.constant 5.000000e-01 : f32
    %45 = vector.broadcast %cst_24 : f32 to vector<8x64xf32>
    %46 = arith.mulf %45, %44 : vector<8x64xf32>
    %47 = arith.mulf %34, %46 : vector<8x64xf32>
    %c384 = arith.constant 384 : index
    %c0_25 = arith.constant 0 : index
    %48 = vector.load %arg3[%c384, %c0_25] : memref<456x192xf32, #tpu.memory_space<vmem>>, vector<64x64xf32>
    %c448 = arith.constant 448 : index
    %c0_26 = arith.constant 0 : index
    %49 = vector.load %arg3[%c448, %c0_26] : memref<456x192xf32, #tpu.memory_space<vmem>>, vector<1x64xf32>
    %cst_27 = arith.constant dense<0.000000e+00> : vector<8x64xf32>
    %50 = tpu.matmul %47, %48, %cst_27 {dimension_numbers = #tpu.dot_dimension_numbers<[1], [0], [0], [1], [0, 0, 1, 1], [], []>} : vector<8x64xf32>, vector<64x64xf32>, vector<8x64xf32> -> vector<8x64xf32>
    %51 = vector.broadcast %49 : vector<1x64xf32> to vector<8x64xf32>
    %52 = arith.addf %50, %51 : vector<8x64xf32>
    %53 = arith.subf %52, %8 : vector<8x64xf32>
    %54 = tpu.iota {dimensions = array<i32: 0>} : vector<8x64xi32>
    %c2_i32 = arith.constant 2 : i32
    %55 = vector.broadcast %c2_i32 : i32 to vector<8x64xi32>
    %56 = arith.cmpi slt, %54, %55 : vector<8x64xi32>
    %cst_28 = arith.constant 0.000000e+00 : f32
    %57 = vector.broadcast %cst_28 : f32 to vector<8x64xf32>
    %58 = arith.select %56, %53, %57 : vector<8x64xi1>, vector<8x64xf32>
    %59 = arith.mulf %58, %58 : vector<8x64xf32>
    %60 = vector.shape_cast %59 : vector<8x64xf32> to vector<1x8x64xf32>
    %cst_29 = arith.constant dense<0.000000e+00> : vector<1xf32>
    %61 = vector.multi_reduction <add>, %60, %cst_29 [1, 2] : vector<1x8x64xf32> to vector<1xf32>
    %62 = vector.shape_cast %61 : vector<1xf32> to vector<1x1x1xf32>
    %63 = vector.extract %62[0, 0, 0] : f32 from vector<1x1x1xf32>
    %cst_30 = arith.constant 7.812500e-03 : f32
    %64 = arith.mulf %63, %cst_30 : f32
    %c0_31 = arith.constant 0 : index
    %c0_32 = arith.constant 0 : index
    %65 = memref.load %arg4[%c0_31, %c0_32] : memref<1x1xf32, #tpu.memory_space<smem>>
    memref.store %64, %arg4[%c0_31, %c0_32] : memref<1x1xf32, #tpu.memory_space<smem>>
    return
  }
}

</mosaic_0001>

<bundles_post_ra>
// kernel: latent_diffusion_forward.3
= control target key start
LH: loop header
LB: loop body
LE: loop exit
PB: predicated region body
PF: predicated region fallthrough
CT: control target
= control target key end

     0   :  { %s2818_s0 = inlined_call_operand.<no memory space> [shape: f32[1], index: 0, kind: input, shape index: {}]   ;;  %s2819_s1 = inlined_call_operand.vmem [shape: f32[8,2048], index: 1, kind: input, shape index: {}]   ;;  %s2820_s2 = inlined_call_operand.vmem [shape: f32[2048,64], index: 2, kind: input, shape index: {}]   ;;  %s2821_s3 = inlined_call_operand.vmem [shape: f32[456,192], index: 3, kind: input, shape index: {}]   ;;  %s2822_s4 = inlined_call_operand.hbm [shape: f32[1,1], index: 4, kind: output, shape index: {}]  }
   0x1   :  { %v66_v0 = vld [vmem:[%s2820_s2 + $0xf8] sm:$0xff]  ;;  %v65_v2 = vld [vmem:[%s2820_s2 + $0xf0] sm:$0xff]  ;;  %v64_v6 = vld [vmem:[%s2820_s2 + $0xe8] sm:$0xff] }
   0x2   :  { %v50_v1 = vld [vmem:[%s2820_s2 + $0x78] sm:$0xff]  ;;  %1340 = vmatprep.subr.mxu0 %v66_v0  ;;  %v49_v4 = vld [vmem:[%s2820_s2 + $0x70] sm:$0xff]  ;;  %v48_v8 = vld [vmem:[%s2820_s2 + $0x68] sm:$0xff] }
   0x3   :  { %v98_v3 = vld [vmem:[%s2820_s2 + $0x1f8] sm:$0xff]  ;;  %1341 = vmatpush3.msra.mxu0 %v50_v1  ;;  %v97_v7 = vld [vmem:[%s2820_s2 + $0x1f0] sm:$0xff]  ;;  %v96_v10 = vld [vmem:[%s2820_s2 + $0x1e8] sm:$0xff] }
   0x4   :  { %v82_v5 = vld [vmem:[%s2820_s2 + $0x178] sm:$0xff]  ;;  %1375 = vmatprep.subr.mxu1 %v98_v3  ;;  %1342 = vmatprep.subr.mxu0 %v65_v2  ;;  %v81_v9 = vld [vmem:[%s2820_s2 + $0x170] sm:$0xff]  ;;  %v63_v11 = vld [vmem:[%s2820_s2 + $0xe0] sm:$0xff] }
   0x5   :  { %1376 = vmatpush3.msra.mxu1 %v82_v5  ;;  %1343 = vmatpush3.msra.mxu0 %v49_v4  ;;  %v80_v12 = vld [vmem:[%s2820_s2 + $0x168] sm:$0xff]  ;;  %v47_v13 = vld [vmem:[%s2820_s2 + $0x60] sm:$0xff]  ;;  %v62_v15 = vld [vmem:[%s2820_s2 + $0xd8] sm:$0xff] }
   0x6   :  { %1377 = vmatprep.subr.mxu1 %v97_v7  ;;  %1344 = vmatprep.subr.mxu0 %v64_v6  ;;  %v95_v14 = vld [vmem:[%s2820_s2 + $0x1e0] sm:$0xff]  ;;  %v46_v17 = vld [vmem:[%s2820_s2 + $0x58] sm:$0xff]  ;;  %v61_v19 = vld [vmem:[%s2820_s2 + $0xd0] sm:$0xff] }
   0x7   :  { %1378 = vmatpush3.msra.mxu1 %v81_v9  ;;  %1345 = vmatpush3.msra.mxu0 %v48_v8  ;;  %v79_v16 = vld [vmem:[%s2820_s2 + $0x160] sm:$0xff]  ;;  %v94_v18 = vld [vmem:[%s2820_s2 + $0x1d8] sm:$0xff]  ;;  %v45_v21 = vld [vmem:[%s2820_s2 + $0x50] sm:$0xff] }
   0x8   :  { %1379 = vmatprep.subr.mxu1 %v96_v10  ;;  %1346 = vmatprep.subr.mxu0 %v63_v11  ;;  %v78_v20 = vld [vmem:[%s2820_s2 + $0x158] sm:$0xff]  ;;  %v93_v22 = vld [vmem:[%s2820_s2 + $0x1d0] sm:$0xff]  ;;  %v60_v23 = vld [vmem:[%s2820_s2 + $0xc8] sm:$0xff] }
   0x9   :  { %1380 = vmatpush3.msra.mxu1 %v80_v12  ;;  %1347 = vmatpush3.msra.mxu0 %v47_v13  ;;  %v77_v24 = vld [vmem:[%s2820_s2 + $0x150] sm:$0xff]  ;;  %v44_v25 = vld [vmem:[%s2820_s2 + $0x48] sm:$0xff]  ;;  %v59_v27 = vld [vmem:[%s2820_s2 + $0xc0] sm:$0xff] }
   0xa   :  { %1381 = vmatprep.subr.mxu1 %v95_v14  ;;  %1348 = vmatprep.subr.mxu0 %v62_v15  ;;  %v92_v26 = vld [vmem:[%s2820_s2 + $0x1c8] sm:$0xff]  ;;  %v43_v29 = vld [vmem:[%s2820_s2 + $0x40] sm:$0xff]  ;;  %v58_v31 = vld [vmem:[%s2820_s2 + $0xb8] sm:$0xff] }
   0xb   :  { %1382 = vmatpush3.msra.mxu1 %v79_v16  ;;  %1349 = vmatpush3.msra.mxu0 %v46_v17  ;;  %v76_v28 = vld [vmem:[%s2820_s2 + $0x148] sm:$0xff]  ;;  %v91_v30 = vld [vmem:[%s2820_s2 + $0x1c0] sm:$0xff]  ;;  %v42_v33 = vld [vmem:[%s2820_s2 + $0x38] sm:$0xff] }
   0xc   :  { %1383 = vmatprep.subr.mxu1 %v94_v18  ;;  %1350 = vmatprep.subr.mxu0 %v61_v19  ;;  %v75_v32 = vld [vmem:[%s2820_s2 + $0x140] sm:$0xff]  ;;  %v90_v34 = vld [vmem:[%s2820_s2 + $0x1b8] sm:$0xff]  ;;  %v57_v35 = vld [vmem:[%s2820_s2 + $0xb0] sm:$0xff] }
   0xd   :  { %1384 = vmatpush3.msra.mxu1 %v78_v20  ;;  %1351 = vmatpush3.msra.mxu0 %v45_v21  ;;  %v74_v36 = vld [vmem:[%s2820_s2 + $0x138] sm:$0xff]  ;;  %v41_v37 = vld [vmem:[%s2820_s2 + $0x30] sm:$0xff]  ;;  %v56_v39 = vld [vmem:[%s2820_s2 + $0xa8] sm:$0xff] }
   0xe   :  { %1385 = vmatprep.subr.mxu1 %v93_v22  ;;  %1352 = vmatprep.subr.mxu0 %v60_v23  ;;  %v89_v38 = vld [vmem:[%s2820_s2 + $0x1b0] sm:$0xff]  ;;  %v40_v41 = vld [vmem:[%s2820_s2 + $0x28] sm:$0xff]  ;;  %v55_v43 = vld [vmem:[%s2820_s2 + $0xa0] sm:$0xff] }
   0xf   :  { %1386 = vmatpush3.msra.mxu1 %v77_v24  ;;  %1353 = vmatpush3.msra.mxu0 %v44_v25  ;;  %v73_v40 = vld [vmem:[%s2820_s2 + $0x130] sm:$0xff]  ;;  %v88_v42 = vld [vmem:[%s2820_s2 + $0x1a8] sm:$0xff]  ;;  %v39_v45 = vld [vmem:[%s2820_s2 + $0x20] sm:$0xff] }
  0x10   :  { %1387 = vmatprep.subr.mxu1 %v92_v26  ;;  %1354 = vmatprep.subr.mxu0 %v59_v27  ;;  %v72_v44 = vld [vmem:[%s2820_s2 + $0x128] sm:$0xff]  ;;  %v87_v46 = vld [vmem:[%s2820_s2 + $0x1a0] sm:$0xff]  ;;  %v54_v47 = vld [vmem:[%s2820_s2 + $0x98] sm:$0xff] }
  0x11   :  { %1388 = vmatpush3.msra.mxu1 %v76_v28  ;;  %1355 = vmatpush3.msra.mxu0 %v43_v29  ;;  %v71_v48 = vld [vmem:[%s2820_s2 + $0x120] sm:$0xff]  ;;  %v38_v49 = vld [vmem:[%s2820_s2 + $0x18] sm:$0xff]  ;;  %v53_v51 = vld [vmem:[%s2820_s2 + $0x90] sm:$0xff] }
  0x12   :  { %1389 = vmatprep.subr.mxu1 %v91_v30  ;;  %1356 = vmatprep.subr.mxu0 %v58_v31  ;;  %v86_v50 = vld [vmem:[%s2820_s2 + $0x198] sm:$0xff]  ;;  %v37_v53 = vld [vmem:[%s2820_s2 + $0x10] sm:$0xff]  ;;  %v52_v55 = vld [vmem:[%s2820_s2 + $0x88] sm:$0xff] }
  0x13   :  { %1390 = vmatpush3.msra.mxu1 %v75_v32  ;;  %1357 = vmatpush3.msra.mxu0 %v42_v33  ;;  %v70_v52 = vld [vmem:[%s2820_s2 + $0x118] sm:$0xff]  ;;  %v85_v54 = vld [vmem:[%s2820_s2 + $0x190] sm:$0xff]  ;;  %v36_v57 = vld [vmem:[%s2820_s2 + $0x8] sm:$0xff] }
  0x14   :  { %1391 = vmatprep.subr.mxu1 %v90_v34  ;;  %1358 = vmatprep.subr.mxu0 %v57_v35  ;;  %v69_v56 = vld [vmem:[%s2820_s2 + $0x110] sm:$0xff]  ;;  %v84_v58 = vld [vmem:[%s2820_s2 + $0x188] sm:$0xff]  ;;  %v51_v59 = vld [vmem:[%s2820_s2 + $0x80] sm:$0xff] }
  0x15   :  { %1392 = vmatpush3.msra.mxu1 %v74_v36  ;;  %1359 = vmatpush3.msra.mxu0 %v41_v37  ;;  %v20_v60 = vld [vmem:[%s2819_s1 + $0x8] sm:$0xff]  ;;  %v35_v61 = vld [vmem:[%s2820_s2] sm:$0xff]  ;;  %v130_v1 = vld [vmem:[%s2820_s2 + $0x2f8] sm:$0xff] }
  0x16   :  { %1393 = vmatprep.subr.mxu1 %v89_v38  ;;  %1360 = vmatprep.subr.mxu0 %v56_v39  ;;  %v68_v62 = vld [vmem:[%s2820_s2 + $0x108] sm:$0xff]  ;;  %v19_v63 = vld [vmem:[%s2819_s1] sm:$0xff]  ;;  %v22_v3 = vld [vmem:[%s2819_s1 + $0x18] sm:$0xff] }
  0x17   :  { %1394 = vmatpush3.msra.mxu1 %v73_v40  ;;  %1361 = vmatpush3.msra.mxu0 %v40_v41  ;;  %v83_v0 = vld [vmem:[%s2820_s2 + $0x180] sm:$0xff]  ;;  %v114_v4 = vld [vmem:[%s2820_s2 + $0x278] sm:$0xff]  ;;  %v21_v5 = vld [vmem:[%s2819_s1 + $0x10] sm:$0xff] }
  0x18   :  { %1395 = vmatprep.subr.mxu1 %v88_v42  ;;  %1362 = vmatprep.subr.mxu0 %v55_v43  ;;  %v67_v2 = vld [vmem:[%s2820_s2 + $0x100] sm:$0xff]  ;;  %v129_v6 = vld [vmem:[%s2820_s2 + $0x2f0] sm:$0xff]  ;;  %v162_v7 = vld [vmem:[%s2820_s2 + $0x3f8] sm:$0xff] }
  0x19   :  { %1396 = vmatpush3.msra.mxu1 %v72_v44  ;;  %1363 = vmatpush3.msra.mxu0 %v39_v45  ;;  %v113_v8 = vld [vmem:[%s2820_s2 + $0x270] sm:$0xff]  ;;  %v146_v9 = vld [vmem:[%s2820_s2 + $0x378] sm:$0xff]  ;;  %v128_v10 = vld [vmem:[%s2820_s2 + $0x2e8] sm:$0xff] }
  0x1a   :  { %1397 = vmatprep.subr.mxu1 %v87_v46  ;;  %1364 = vmatprep.subr.mxu0 %v54_v47  ;;  %v161_v11 = vld [vmem:[%s2820_s2 + $0x3f0] sm:$0xff]  ;;  %v112_v12 = vld [vmem:[%s2820_s2 + $0x268] sm:$0xff]  ;;  %v127_v14 = vld [vmem:[%s2820_s2 + $0x2e0] sm:$0xff] }
  0x1b   :  { %1398 = vmatpush3.msra.mxu1 %v71_v48  ;;  %1365 = vmatpush3.msra.mxu0 %v38_v49  ;;  %v145_v13 = vld [vmem:[%s2820_s2 + $0x370] sm:$0xff]  ;;  %v160_v15 = vld [vmem:[%s2820_s2 + $0x3e8] sm:$0xff]  ;;  %v111_v16 = vld [vmem:[%s2820_s2 + $0x260] sm:$0xff] }
  0x1c   :  { %1399 = vmatprep.subr.mxu1 %v86_v50  ;;  %1366 = vmatprep.subr.mxu0 %v53_v51  ;;  %v144_v17 = vld [vmem:[%s2820_s2 + $0x368] sm:$0xff]  ;;  %v126_v18 = vld [vmem:[%s2820_s2 + $0x2d8] sm:$0xff]  ;;  %v159_v19 = vld [vmem:[%s2820_s2 + $0x3e0] sm:$0xff] }
  0x1d   :  { %1400 = vmatpush3.msra.mxu1 %v70_v52  ;;  %1367 = vmatpush3.msra.mxu0 %v37_v53  ;;  %v110_v20 = vld [vmem:[%s2820_s2 + $0x258] sm:$0xff]  ;;  %v143_v21 = vld [vmem:[%s2820_s2 + $0x360] sm:$0xff]  ;;  %v125_v22 = vld [vmem:[%s2820_s2 + $0x2d0] sm:$0xff] }
  0x1e   :  { %1401 = vmatprep.subr.mxu1 %v85_v54  ;;  %1368 = vmatprep.subr.mxu0 %v52_v55  ;;  %v158_v23 = vld [vmem:[%s2820_s2 + $0x3d8] sm:$0xff]  ;;  %v109_v24 = vld [vmem:[%s2820_s2 + $0x250] sm:$0xff]  ;;  %v124_v26 = vld [vmem:[%s2820_s2 + $0x2c8] sm:$0xff] }
  0x1f   :  { %1402 = vmatpush3.msra.mxu1 %v69_v56  ;;  %1369 = vmatpush3.msra.mxu0 %v36_v57  ;;  %v142_v25 = vld [vmem:[%s2820_s2 + $0x358] sm:$0xff]  ;;  %v157_v27 = vld [vmem:[%s2820_s2 + $0x3d0] sm:$0xff]  ;;  %v108_v28 = vld [vmem:[%s2820_s2 + $0x248] sm:$0xff] }
  0x20   :  { %1403 = vmatprep.subr.mxu1 %v84_v58  ;;  %1370 = vmatprep.subr.mxu0 %v51_v59  ;;  %v141_v29 = vld [vmem:[%s2820_s2 + $0x350] sm:$0xff]  ;;  %v123_v30 = vld [vmem:[%s2820_s2 + $0x2c0] sm:$0xff]  ;;  %v156_v31 = vld [vmem:[%s2820_s2 + $0x3c8] sm:$0xff] }
  0x21   :  { %356 = vmatprep.mubr.f32.mxu0 %v20_v60  ;;  %1371 = vmatpush3.msra.mxu0 %v35_v61  ;;  %v107_v32 = vld [vmem:[%s2820_s2 + $0x240] sm:$0xff]  ;;  %v140_v33 = vld [vmem:[%s2820_s2 + $0x348] sm:$0xff]  ;;  %v122_v34 = vld [vmem:[%s2820_s2 + $0x2b8] sm:$0xff] }
  0x22   :  { %1404 = vmatpush3.msra.mxu1 %v68_v62  ;;  %357 = vmatmul.mubr.f32.vlgmr.msra.gmra.mxu0 %v19_v63  ;;  %v155_v35 = vld [vmem:[%s2820_s2 + $0x3c0] sm:$0xff]  ;;  %v106_v36 = vld [vmem:[%s2820_s2 + $0x238] sm:$0xff]  ;;  %v121_v38 = vld [vmem:[%s2820_s2 + $0x2b0] sm:$0xff] }
  0x23   :  { %1405 = vmatprep.subr.mxu1 %v83_v0  ;;  %1410 = vmatprep.subr.mxu0 %v130_v1  ;;  %v139_v37 = vld [vmem:[%s2820_s2 + $0x340] sm:$0xff]  ;;  %v154_v39 = vld [vmem:[%s2820_s2 + $0x3b8] sm:$0xff]  ;;  %v105_v40 = vld [vmem:[%s2820_s2 + $0x230] sm:$0xff] }
  0x24   :  { %1406 = vmatpush3.msra.mxu1 %v67_v2  ;;  %426 = vmatprep.mubr.f32.mxu1 %v22_v3  ;;  %v138_v41 = vld [vmem:[%s2820_s2 + $0x338] sm:$0xff]  ;;  %v120_v42 = vld [vmem:[%s2820_s2 + $0x2a8] sm:$0xff]  ;;  %v153_v43 = vld [vmem:[%s2820_s2 + $0x3b0] sm:$0xff] }
  0x25   :  { %1411 = vmatpush3.msra.mxu0 %v114_v4  ;;  %427 = vmatmul.mubr.f32.vlgmr.msra.gmra.mxu1 %v21_v5  ;;  %v104_v44 = vld [vmem:[%s2820_s2 + $0x228] sm:$0xff]  ;;  %v137_v45 = vld [vmem:[%s2820_s2 + $0x330] sm:$0xff]  ;;  %v119_v46 = vld [vmem:[%s2820_s2 + $0x2a0] sm:$0xff] }
  0x26   :  { %1412 = vmatprep.subr.mxu0 %v129_v6  ;;  %1445 = vmatprep.subr.mxu1 %v162_v7  ;;  %v152_v47 = vld [vmem:[%s2820_s2 + $0x3a8] sm:$0xff]  ;;  %v103_v48 = vld [vmem:[%s2820_s2 + $0x220] sm:$0xff]  ;;  %v118_v50 = vld [vmem:[%s2820_s2 + $0x298] sm:$0xff] }
  0x27   :  { %1413 = vmatpush3.msra.mxu0 %v113_v8  ;;  %1446 = vmatpush3.msra.mxu1 %v146_v9  ;;  %v136_v49 = vld [vmem:[%s2820_s2 + $0x328] sm:$0xff]  ;;  %v151_v51 = vld [vmem:[%s2820_s2 + $0x3a0] sm:$0xff]  ;;  %v102_v52 = vld [vmem:[%s2820_s2 + $0x218] sm:$0xff] }
  0x28   :  { %1414 = vmatprep.subr.mxu0 %v128_v10  ;;  %1447 = vmatprep.subr.mxu1 %v161_v11  ;;  %v135_v53 = vld [vmem:[%s2820_s2 + $0x320] sm:$0xff]  ;;  %v117_v54 = vld [vmem:[%s2820_s2 + $0x290] sm:$0xff]  ;;  %v150_v55 = vld [vmem:[%s2820_s2 + $0x398] sm:$0xff] }
  0x29   :  { %1415 = vmatpush3.msra.mxu0 %v112_v12  ;;  %1448 = vmatpush3.msra.mxu1 %v145_v13  ;;  %v101_v56 = vld [vmem:[%s2820_s2 + $0x210] sm:$0xff]  ;;  %v134_v57 = vld [vmem:[%s2820_s2 + $0x318] sm:$0xff]  ;;  %v116_v58 = vld [vmem:[%s2820_s2 + $0x288] sm:$0xff] }
  0x2a   :  { %1416 = vmatprep.subr.mxu0 %v127_v14  ;;  %1449 = vmatprep.subr.mxu1 %v160_v15  ;;  %v149_v59 = vld [vmem:[%s2820_s2 + $0x390] sm:$0xff]  ;;  %v100_v60 = vld [vmem:[%s2820_s2 + $0x208] sm:$0xff]  ;;  %v115_v62 = vld [vmem:[%s2820_s2 + $0x280] sm:$0xff] }
  0x2b   :  { %1417 = vmatpush3.msra.mxu0 %v111_v16  ;;  %1450 = vmatpush3.msra.mxu1 %v144_v17  ;;  %v133_v61 = vld [vmem:[%s2820_s2 + $0x310] sm:$0xff]  ;;  %v148_v63 = vld [vmem:[%s2820_s2 + $0x388] sm:$0xff]  ;;  %v99_v0 = vld [vmem:[%s2820_s2 + $0x200] sm:$0xff] }
  0x2c   :  { %1418 = vmatprep.subr.mxu0 %v126_v18  ;;  %1451 = vmatprep.subr.mxu1 %v159_v19  ;;  %v24_v1 = vld [vmem:[%s2819_s1 + $0x28] sm:$0xff]  ;;  %v23_v3 = vld [vmem:[%s2819_s1 + $0x20] sm:$0xff]  ;;  %v194_v5 = vld [vmem:[%s2820_s2 + $0x4f8] sm:$0xff] }
  0x2d   :  { %1419 = vmatpush3.msra.mxu0 %v110_v20  ;;  %1452 = vmatpush3.msra.mxu1 %v143_v21  ;;  %v132_v2 = vld [vmem:[%s2820_s2 + $0x308] sm:$0xff]  ;;  %v147_v4 = vld [vmem:[%s2820_s2 + $0x380] sm:$0xff]  ;;  %v26_v7 = vld [vmem:[%s2819_s1 + $0x38] sm:$0xff] }
  0x2e   :  { %1420 = vmatprep.subr.mxu0 %v125_v22  ;;  %1453 = vmatprep.subr.mxu1 %v158_v23  ;;  %v131_v6 = vld [vmem:[%s2820_s2 + $0x300] sm:$0xff]  ;;  %v178_v8 = vld [vmem:[%s2820_s2 + $0x478] sm:$0xff]  ;;  %v25_v9 = vld [vmem:[%s2819_s1 + $0x30] sm:$0xff] }
  0x2f   :  { %1421 = vmatpush3.msra.mxu0 %v109_v24  ;;  %1454 = vmatpush3.msra.mxu1 %v142_v25  ;;  %v193_v10 = vld [vmem:[%s2820_s2 + $0x4f0] sm:$0xff]  ;;  %v226_v11 = vld [vmem:[%s2820_s2 + $0x5f8] sm:$0xff]  ;;  %v192_v14 = vld [vmem:[%s2820_s2 + $0x4e8] sm:$0xff] }
  0x30   :  { %1422 = vmatprep.subr.mxu0 %v124_v26  ;;  %1455 = vmatprep.subr.mxu1 %v157_v27  ;;  %v177_v12 = vld [vmem:[%s2820_s2 + $0x470] sm:$0xff]  ;;  %v210_v13 = vld [vmem:[%s2820_s2 + $0x578] sm:$0xff]  ;;  %v176_v16 = vld [vmem:[%s2820_s2 + $0x468] sm:$0xff] }
  0x31   :  { %1423 = vmatpush3.msra.mxu0 %v108_v28  ;;  %1456 = vmatpush3.msra.mxu1 %v141_v29  ;;  %v225_v15 = vld [vmem:[%s2820_s2 + $0x5f0] sm:$0xff]  ;;  %v191_v18 = vld [vmem:[%s2820_s2 + $0x4e0] sm:$0xff]  ;;  %v224_v19 = vld [vmem:[%s2820_s2 + $0x5e8] sm:$0xff] }
  0x32   :  { %1424 = vmatprep.subr.mxu0 %v123_v30  ;;  %1457 = vmatprep.subr.mxu1 %v156_v31  ;;  %v209_v17 = vld [vmem:[%s2820_s2 + $0x570] sm:$0xff]  ;;  %v175_v20 = vld [vmem:[%s2820_s2 + $0x460] sm:$0xff]  ;;  %v208_v21 = vld [vmem:[%s2820_s2 + $0x568] sm:$0xff] }
  0x33   :  { %1425 = vmatpush3.msra.mxu0 %v107_v32  ;;  %1458 = vmatpush3.msra.mxu1 %v140_v33  ;;  %v190_v22 = vld [vmem:[%s2820_s2 + $0x4d8] sm:$0xff]  ;;  %v223_v23 = vld [vmem:[%s2820_s2 + $0x5e0] sm:$0xff]  ;;  %v189_v26 = vld [vmem:[%s2820_s2 + $0x4d0] sm:$0xff] }
  0x34   :  { %1426 = vmatprep.subr.mxu0 %v122_v34  ;;  %1459 = vmatprep.subr.mxu1 %v155_v35  ;;  %v174_v24 = vld [vmem:[%s2820_s2 + $0x458] sm:$0xff]  ;;  %v207_v25 = vld [vmem:[%s2820_s2 + $0x560] sm:$0xff]  ;;  %v173_v28 = vld [vmem:[%s2820_s2 + $0x450] sm:$0xff] }
  0x35   :  { %1427 = vmatpush3.msra.mxu0 %v106_v36  ;;  %1460 = vmatpush3.msra.mxu1 %v139_v37  ;;  %v222_v27 = vld [vmem:[%s2820_s2 + $0x5d8] sm:$0xff]  ;;  %v188_v30 = vld [vmem:[%s2820_s2 + $0x4c8] sm:$0xff]  ;;  %v221_v31 = vld [vmem:[%s2820_s2 + $0x5d0] sm:$0xff] }
  0x36   :  { %1428 = vmatprep.subr.mxu0 %v121_v38  ;;  %1461 = vmatprep.subr.mxu1 %v154_v39  ;;  %v206_v29 = vld [vmem:[%s2820_s2 + $0x558] sm:$0xff]  ;;  %v172_v32 = vld [vmem:[%s2820_s2 + $0x448] sm:$0xff]  ;;  %v205_v33 = vld [vmem:[%s2820_s2 + $0x550] sm:$0xff] }
  0x37   :  { %1429 = vmatpush3.msra.mxu0 %v105_v40  ;;  %1462 = vmatpush3.msra.mxu1 %v138_v41  ;;  %v187_v34 = vld [vmem:[%s2820_s2 + $0x4c0] sm:$0xff]  ;;  %v220_v35 = vld [vmem:[%s2820_s2 + $0x5c8] sm:$0xff]  ;;  %v186_v38 = vld [vmem:[%s2820_s2 + $0x4b8] sm:$0xff] }
  0x38   :  { %1430 = vmatprep.subr.mxu0 %v120_v42  ;;  %1463 = vmatprep.subr.mxu1 %v153_v43  ;;  %v171_v36 = vld [vmem:[%s2820_s2 + $0x440] sm:$0xff]  ;;  %v204_v37 = vld [vmem:[%s2820_s2 + $0x548] sm:$0xff]  ;;  %v170_v40 = vld [vmem:[%s2820_s2 + $0x438] sm:$0xff] }
  0x39   :  { %1431 = vmatpush3.msra.mxu0 %v104_v44  ;;  %1464 = vmatpush3.msra.mxu1 %v137_v45  ;;  %v219_v39 = vld [vmem:[%s2820_s2 + $0x5c0] sm:$0xff]  ;;  %v185_v42 = vld [vmem:[%s2820_s2 + $0x4b0] sm:$0xff]  ;;  %v218_v43 = vld [vmem:[%s2820_s2 + $0x5b8] sm:$0xff] }
  0x3a   :  { %1432 = vmatprep.subr.mxu0 %v119_v46  ;;  %1465 = vmatprep.subr.mxu1 %v152_v47  ;;  %v203_v41 = vld [vmem:[%s2820_s2 + $0x540] sm:$0xff]  ;;  %v169_v44 = vld [vmem:[%s2820_s2 + $0x430] sm:$0xff]  ;;  %v202_v45 = vld [vmem:[%s2820_s2 + $0x538] sm:$0xff] }
  0x3b   :  { %1433 = vmatpush3.msra.mxu0 %v103_v48  ;;  %1466 = vmatpush3.msra.mxu1 %v136_v49  ;;  %v184_v46 = vld [vmem:[%s2820_s2 + $0x4a8] sm:$0xff]  ;;  %v217_v47 = vld [vmem:[%s2820_s2 + $0x5b0] sm:$0xff] }
  0x3c   :  { %1434 = vmatprep.subr.mxu0 %v118_v50  ;;  %1467 = vmatprep.subr.mxu1 %v151_v51  ;;  %v168_v48 = vld [vmem:[%s2820_s2 + $0x428] sm:$0xff]  ;;  %v201_v49 = vld [vmem:[%s2820_s2 + $0x530] sm:$0xff]  ;;  %v183_v50 = vld [vmem:[%s2820_s2 + $0x4a0] sm:$0xff] }
  0x3d   :  { %1435 = vmatpush3.msra.mxu0 %v102_v52  ;;  %1468 = vmatpush3.msra.mxu1 %v135_v53  ;;  %v216_v51 = vld [vmem:[%s2820_s2 + $0x5a8] sm:$0xff]  ;;  %v167_v52 = vld [vmem:[%s2820_s2 + $0x420] sm:$0xff] }
  0x3e   :  { %1436 = vmatprep.subr.mxu0 %v117_v54  ;;  %1469 = vmatprep.subr.mxu1 %v150_v55  ;;  %v200_v53 = vld [vmem:[%s2820_s2 + $0x528] sm:$0xff]  ;;  %v182_v54 = vld [vmem:[%s2820_s2 + $0x498] sm:$0xff]  ;;  %v215_v55 = vld [vmem:[%s2820_s2 + $0x5a0] sm:$0xff] }
  0x3f   :  { %1437 = vmatpush3.msra.mxu0 %v101_v56  ;;  %1470 = vmatpush3.msra.mxu1 %v134_v57  ;;  %v166_v56 = vld [vmem:[%s2820_s2 + $0x418] sm:$0xff]  ;;  %v199_v57 = vld [vmem:[%s2820_s2 + $0x520] sm:$0xff] }
  0x40   :  { %1438 = vmatprep.subr.mxu0 %v116_v58  ;;  %1471 = vmatprep.subr.mxu1 %v149_v59  ;;  %v181_v58 = vld [vmem:[%s2820_s2 + $0x490] sm:$0xff]  ;;  %v214_v59 = vld [vmem:[%s2820_s2 + $0x598] sm:$0xff] }
  0x41   :  { %1439 = vmatpush3.msra.mxu0 %v100_v60  ;;  %1472 = vmatpush3.msra.mxu1 %v133_v61  ;;  %v165_v60 = vld [vmem:[%s2820_s2 + $0x410] sm:$0xff]  ;;  %v198_v61 = vld [vmem:[%s2820_s2 + $0x518] sm:$0xff] }
  0x42   :  { %1440 = vmatprep.subr.mxu0 %v115_v62  ;;  %1473 = vmatprep.subr.mxu1 %v148_v63  ;;  %v180_v62 = vld [vmem:[%s2820_s2 + $0x488] sm:$0xff]  ;;  %v213_v63 = vld [vmem:[%s2820_s2 + $0x590] sm:$0xff] }
  0x43   :  { %1441 = vmatpush3.msra.mxu0 %v99_v0  ;;  %496 = vmatprep.mubr.f32.mxu0 %v24_v1  ;;  %v164_v0 = vld [vmem:[%s2820_s2 + $0x408] sm:$0xff]  ;;  %v197_v1 = vld [vmem:[%s2820_s2 + $0x510] sm:$0xff] }
  0x44   :  { %1474 = vmatpush3.msra.mxu1 %v132_v2  ;;  %497 = vmatmul.mubr.f32.vlgmr.msra.gmra.mxu0 %v23_v3  ;;  %v179_v2 = vld [vmem:[%s2820_s2 + $0x480] sm:$0xff]  ;;  %v212_v3 = vld [vmem:[%s2820_s2 + $0x588] sm:$0xff] }
  0x45   :  { %1475 = vmatprep.subr.mxu1 %v147_v4  ;;  %1480 = vmatprep.subr.mxu0 %v194_v5  ;;  %v163_v4 = vld [vmem:[%s2820_s2 + $0x400] sm:$0xff]  ;;  %v28_v5 = vld [vmem:[%s2819_s1 + $0x48] sm:$0xff] }
  0x46   :  { %1476 = vmatpush3.msra.mxu1 %v131_v6  ;;  %566 = vmatprep.mubr.f32.mxu1 %v26_v7  ;;  %v196_v6 = vld [vmem:[%s2820_s2 + $0x508] sm:$0xff]  ;;  %v27_v7 = vld [vmem:[%s2819_s1 + $0x40] sm:$0xff] }
  0x47   :  { %1481 = vmatpush3.msra.mxu0 %v178_v8  ;;  %567 = vmatmul.mubr.f32.vlgmr.msra.gmra.mxu1 %v25_v9  ;;  %v211_v8 = vld [vmem:[%s2820_s2 + $0x580] sm:$0xff]  ;;  %v258_v9 = vld [vmem:[%s2820_s2 + $0x6f8] sm:$0xff] }
  0x48   :  { %1482 = vmatprep.subr.mxu0 %v193_v10  ;;  %1515 = vmatprep.subr.mxu1 %v226_v11  ;;  %v195_v10 = vld [vmem:[%s2820_s2 + $0x500] sm:$0xff]  ;;  %v30_v11 = vld [vmem:[%s2819_s1 + $0x58] sm:$0xff] }
  0x49   :  { %1483 = vmatpush3.msra.mxu0 %v177_v12  ;;  %1516 = vmatpush3.msra.mxu1 %v210_v13  ;;  %v242_v12 = vld [vmem:[%s2820_s2 + $0x678] sm:$0xff] }
  0x4a   :  { %1484 = vmatprep.subr.mxu0 %v192_v14  ;;  %1517 = vmatprep.subr.mxu1 %v225_v15 }
  0x4b   :  { %1485 = vmatpush3.msra.mxu0 %v176_v16  ;;  %1518 = vmatpush3.msra.mxu1 %v209_v17 }
  0x4c   :  { %1486 = vmatprep.subr.mxu0 %v191_v18  ;;  %1519 = vmatprep.subr.mxu1 %v224_v19 }
  0x4d   :  { %1487 = vmatpush3.msra.mxu0 %v175_v20  ;;  %1520 = vmatpush3.msra.mxu1 %v208_v21 }
  0x4e   :  { %1488 = vmatprep.subr.mxu0 %v190_v22  ;;  %1521 = vmatprep.subr.mxu1 %v223_v23 }
  0x4f   :  { %1489 = vmatpush3.msra.mxu0 %v174_v24  ;;  %1522 = vmatpush3.msra.mxu1 %v207_v25 }
  0x50   :  { %1490 = vmatprep.subr.mxu0 %v189_v26  ;;  %1523 = vmatprep.subr.mxu1 %v222_v27 }
  0x51   :  { %1491 = vmatpush3.msra.mxu0 %v173_v28  ;;  %1524 = vmatpush3.msra.mxu1 %v206_v29 }
  0x52   :  { %1492 = vmatprep.subr.mxu0 %v188_v30  ;;  %1525 = vmatprep.subr.mxu1 %v221_v31 }
  0x53   :  { %1493 = vmatpush3.msra.mxu0 %v172_v32  ;;  %1526 = vmatpush3.msra.mxu1 %v205_v33 }
  0x54   :  { %1494 = vmatprep.subr.mxu0 %v187_v34  ;;  %1527 = vmatprep.subr.mxu1 %v220_v35 }
  0x55   :  { %1495 = vmatpush3.msra.mxu0 %v171_v36  ;;  %1528 = vmatpush3.msra.mxu1 %v204_v37 }
  0x56   :  { %1496 = vmatprep.subr.mxu0 %v186_v38  ;;  %1529 = vmatprep.subr.mxu1 %v219_v39 }
  0x57   :  { %1497 = vmatpush3.msra.mxu0 %v170_v40  ;;  %1530 = vmatpush3.msra.mxu1 %v203_v41 }
  0x58   :  { %1498 = vmatprep.subr.mxu0 %v185_v42  ;;  %1531 = vmatprep.subr.mxu1 %v218_v43 }
  0x59   :  { %1499 = vmatpush3.msra.mxu0 %v169_v44  ;;  %1532 = vmatpush3.msra.mxu1 %v202_v45 }
  0x5a   :  { %1500 = vmatprep.subr.mxu0 %v184_v46  ;;  %1533 = vmatprep.subr.mxu1 %v217_v47 }
  0x5b   :  { %1501 = vmatpush3.msra.mxu0 %v168_v48  ;;  %1534 = vmatpush3.msra.mxu1 %v201_v49 }
  0x5c   :  { %1502 = vmatprep.subr.mxu0 %v183_v50  ;;  %1535 = vmatprep.subr.mxu1 %v216_v51 }
  0x5d   :  { %1503 = vmatpush3.msra.mxu0 %v167_v52  ;;  %1536 = vmatpush3.msra.mxu1 %v200_v53 }
  0x5e   :  { %1504 = vmatprep.subr.mxu0 %v182_v54  ;;  %1537 = vmatprep.subr.mxu1 %v215_v55 }
  0x5f   :  { %1505 = vmatpush3.msra.mxu0 %v166_v56  ;;  %1538 = vmatpush3.msra.mxu1 %v199_v57 }
  0x60   :  { %1506 = vmatprep.subr.mxu0 %v181_v58  ;;  %1539 = vmatprep.subr.mxu1 %v214_v59 }
  0x61   :  { %1507 = vmatpush3.msra.mxu0 %v165_v60  ;;  %1540 = vmatpush3.msra.mxu1 %v198_v61 }
  0x62   :  { %1508 = vmatprep.subr.mxu0 %v180_v62  ;;  %1541 = vmatprep.subr.mxu1 %v213_v63 }
  0x63   :  { %1509 = vmatpush3.msra.mxu0 %v164_v0  ;;  %1542 = vmatpush3.msra.mxu1 %v197_v1 }
  0x64   :  { %1510 = vmatprep.subr.mxu0 %v179_v2  ;;  %1543 = vmatprep.subr.mxu1 %v212_v3 }
  0x65   :  { %1511 = vmatpush3.msra.mxu0 %v163_v4  ;;  %636 = vmatprep.mubr.f32.mxu0 %v28_v5 }
  0x66   :  { %1544 = vmatpush3.msra.mxu1 %v196_v6 }
  0x67   :  { %10 = vsyncpa [#allocation4], 0  ;;  %637 = vmatmul.mubr.f32.vlgmr.msra.gmra.mxu0 %v27_v7  ;;  %1545 = vmatprep.subr.mxu1 %v211_v8  ;;  %v29_v13 = vld [vmem:[%s2819_s1 + $0x50] sm:$0xff]  ;;  %v290_v15 = vld [vmem:[%s2820_s2 + $0x7f8] sm:$0xff]  ;;  %vm895_vm0 = vcmask 523264   ;;  %vm990_vm1 = vcmask 261120  }
  0x68   :  { %v257_v14 = vld [vmem:[%s2820_s2 + $0x6f0] sm:$0xff]  ;;  %1550 = vmatprep.subr.mxu0 %v258_v9  ;;  %1546 = vmatpush3.msra.mxu1 %v195_v10  ;;  %v274_v17 = vld [vmem:[%s2820_s2 + $0x778] sm:$0xff]  ;;  %v256_v18 = vld [vmem:[%s2820_s2 + $0x6e8] sm:$0xff]  ;;  %vm1729_vm2 = vmmov 0   ;;  %s1730_s18 = smov [#allocation3]  }
  0x69   :  { %v241_v16 = vld [vmem:[%s2820_s2 + $0x670] sm:$0xff]  ;;  %706 = vmatprep.mubr.f32.mxu1 %v30_v11  ;;  %1551 = vmatpush3.msra.mxu0 %v242_v12  ;;  %v240_v20 = vld [vmem:[%s2820_s2 + $0x668] sm:$0xff]  ;;  %v255_v22 = vld [vmem:[%s2820_s2 + $0x6e0] sm:$0xff] }
  0x6a   :  { %707 = vmatmul.mubr.f32.vlgmr.msra.gmra.mxu1 %v29_v13  ;;  %1552 = vmatprep.subr.mxu0 %v257_v14  ;;  %v289_v19 = vld [vmem:[%s2820_s2 + $0x7f0] sm:$0xff]  ;;  %v288_v23 = vld [vmem:[%s2820_s2 + $0x7e8] sm:$0xff]  ;;  %v239_v24 = vld [vmem:[%s2820_s2 + $0x660] sm:$0xff] }
  0x6b   :  { %1585 = vmatprep.subr.mxu1 %v290_v15  ;;  %1553 = vmatpush3.msra.mxu0 %v241_v16  ;;  %v273_v21 = vld [vmem:[%s2820_s2 + $0x770] sm:$0xff]  ;;  %v272_v25 = vld [vmem:[%s2820_s2 + $0x768] sm:$0xff]  ;;  %v254_v26 = vld [vmem:[%s2820_s2 + $0x6d8] sm:$0xff] }
  0x6c   :  { %1586 = vmatpush3.msra.mxu1 %v274_v17  ;;  %1554 = vmatprep.subr.mxu0 %v256_v18  ;;  %v287_v27 = vld [vmem:[%s2820_s2 + $0x7e0] sm:$0xff]  ;;  %v238_v28 = vld [vmem:[%s2820_s2 + $0x658] sm:$0xff]  ;;  %v253_v30 = vld [vmem:[%s2820_s2 + $0x6d0] sm:$0xff]  ;;  %v1727_v17 = vmov 0.0  }
  0x6d   :  { %1587 = vmatprep.subr.mxu1 %v289_v19  ;;  %1555 = vmatpush3.msra.mxu0 %v240_v20  ;;  %v271_v29 = vld [vmem:[%s2820_s2 + $0x760] sm:$0xff]  ;;  %v286_v31 = vld [vmem:[%s2820_s2 + $0x7d8] sm:$0xff]  ;;  %v237_v32 = vld [vmem:[%s2820_s2 + $0x650] sm:$0xff] }
  0x6e   :  { %1588 = vmatpush3.msra.mxu1 %v273_v21  ;;  %1556 = vmatprep.subr.mxu0 %v255_v22  ;;  %v270_v33 = vld [vmem:[%s2820_s2 + $0x758] sm:$0xff]  ;;  %v252_v34 = vld [vmem:[%s2820_s2 + $0x6c8] sm:$0xff]  ;;  %v285_v35 = vld [vmem:[%s2820_s2 + $0x7d0] sm:$0xff] }
  0x6f   :  { %1589 = vmatprep.subr.mxu1 %v288_v23  ;;  %1557 = vmatpush3.msra.mxu0 %v239_v24  ;;  %v236_v36 = vld [vmem:[%s2820_s2 + $0x648] sm:$0xff]  ;;  %v269_v37 = vld [vmem:[%s2820_s2 + $0x750] sm:$0xff]  ;;  %v251_v38 = vld [vmem:[%s2820_s2 + $0x6c0] sm:$0xff]  ;;  %v1728_v23 = vmov 0  }
  0x70   :  { %1590 = vmatpush3.msra.mxu1 %v272_v25  ;;  %1558 = vmatprep.subr.mxu0 %v254_v26  ;;  %v284_v39 = vld [vmem:[%s2820_s2 + $0x7c8] sm:$0xff]  ;;  %v235_v40 = vld [vmem:[%s2820_s2 + $0x640] sm:$0xff]  ;;  %v250_v42 = vld [vmem:[%s2820_s2 + $0x6b8] sm:$0xff] }
  0x71   :  { %1591 = vmatprep.subr.mxu1 %v287_v27  ;;  %1559 = vmatpush3.msra.mxu0 %v238_v28  ;;  %v268_v41 = vld [vmem:[%s2820_s2 + $0x748] sm:$0xff]  ;;  %v283_v43 = vld [vmem:[%s2820_s2 + $0x7c0] sm:$0xff]  ;;  %v234_v44 = vld [vmem:[%s2820_s2 + $0x638] sm:$0xff] }
  0x72   :  { %1592 = vmatpush3.msra.mxu1 %v271_v29  ;;  %1560 = vmatprep.subr.mxu0 %v253_v30  ;;  %v267_v45 = vld [vmem:[%s2820_s2 + $0x740] sm:$0xff]  ;;  %v249_v46 = vld [vmem:[%s2820_s2 + $0x6b0] sm:$0xff]  ;;  %v282_v47 = vld [vmem:[%s2820_s2 + $0x7b8] sm:$0xff] }
  0x73   :  { %1593 = vmatprep.subr.mxu1 %v286_v31  ;;  %1561 = vmatpush3.msra.mxu0 %v237_v32  ;;  %v233_v48 = vld [vmem:[%s2820_s2 + $0x630] sm:$0xff]  ;;  %v266_v49 = vld [vmem:[%s2820_s2 + $0x738] sm:$0xff]  ;;  %v248_v50 = vld [vmem:[%s2820_s2 + $0x6a8] sm:$0xff] }
  0x74   :  { %1594 = vmatpush3.msra.mxu1 %v270_v33  ;;  %1562 = vmatprep.subr.mxu0 %v252_v34  ;;  %v281_v51 = vld [vmem:[%s2820_s2 + $0x7b0] sm:$0xff]  ;;  %v232_v52 = vld [vmem:[%s2820_s2 + $0x628] sm:$0xff]  ;;  %v247_v54 = vld [vmem:[%s2820_s2 + $0x6a0] sm:$0xff] }
  0x75   :  { %1595 = vmatprep.subr.mxu1 %v285_v35  ;;  %1563 = vmatpush3.msra.mxu0 %v236_v36  ;;  %v265_v53 = vld [vmem:[%s2820_s2 + $0x730] sm:$0xff]  ;;  %v280_v55 = vld [vmem:[%s2820_s2 + $0x7a8] sm:$0xff]  ;;  %v231_v56 = vld [vmem:[%s2820_s2 + $0x620] sm:$0xff] }
  0x76   :  { %1596 = vmatpush3.msra.mxu1 %v269_v37  ;;  %1564 = vmatprep.subr.mxu0 %v251_v38  ;;  %v264_v57 = vld [vmem:[%s2820_s2 + $0x728] sm:$0xff]  ;;  %v246_v58 = vld [vmem:[%s2820_s2 + $0x698] sm:$0xff]  ;;  %v279_v59 = vld [vmem:[%s2820_s2 + $0x7a0] sm:$0xff] }
  0x77   :  { %1597 = vmatprep.subr.mxu1 %v284_v39  ;;  %1565 = vmatpush3.msra.mxu0 %v235_v40  ;;  %v230_v60 = vld [vmem:[%s2820_s2 + $0x618] sm:$0xff]  ;;  %v263_v61 = vld [vmem:[%s2820_s2 + $0x720] sm:$0xff]  ;;  %v245_v62 = vld [vmem:[%s2820_s2 + $0x690] sm:$0xff] }
  0x78   :  { %1598 = vmatpush3.msra.mxu1 %v268_v41  ;;  %1566 = vmatprep.subr.mxu0 %v250_v42  ;;  %v278_v63 = vld [vmem:[%s2820_s2 + $0x798] sm:$0xff]  ;;  %v229_v0 = vld [vmem:[%s2820_s2 + $0x610] sm:$0xff]  ;;  %v244_v2 = vld [vmem:[%s2820_s2 + $0x688] sm:$0xff] }
  0x79   :  { %1599 = vmatprep.subr.mxu1 %v283_v43  ;;  %1567 = vmatpush3.msra.mxu0 %v234_v44  ;;  %v262_v1 = vld [vmem:[%s2820_s2 + $0x718] sm:$0xff]  ;;  %v277_v3 = vld [vmem:[%s2820_s2 + $0x790] sm:$0xff]  ;;  %v228_v4 = vld [vmem:[%s2820_s2 + $0x608] sm:$0xff] }
  0x7a   :  { %1600 = vmatpush3.msra.mxu1 %v267_v45  ;;  %1568 = vmatprep.subr.mxu0 %v249_v46  ;;  %v261_v5 = vld [vmem:[%s2820_s2 + $0x710] sm:$0xff]  ;;  %v243_v6 = vld [vmem:[%s2820_s2 + $0x680] sm:$0xff]  ;;  %v276_v7 = vld [vmem:[%s2820_s2 + $0x788] sm:$0xff] }
  0x7b   :  { %1601 = vmatprep.subr.mxu1 %v282_v47  ;;  %1569 = vmatpush3.msra.mxu0 %v233_v48  ;;  %v227_v8 = vld [vmem:[%s2820_s2 + $0x600] sm:$0xff]  ;;  %v32_v9 = vld [vmem:[%s2819_s1 + $0x68] sm:$0xff]  ;;  %v34_v14 = vld [vmem:[%s2819_s1 + $0x78] sm:$0xff] }
  0x7c   :  { %1602 = vmatpush3.msra.mxu1 %v266_v49  ;;  %1570 = vmatprep.subr.mxu0 %v248_v50  ;;  %v260_v10 = vld [vmem:[%s2820_s2 + $0x708] sm:$0xff]  ;;  %v31_v11 = vld [vmem:[%s2819_s1 + $0x60] sm:$0xff]  ;;  %v33_v16 = vld [vmem:[%s2819_s1 + $0x70] sm:$0xff] }
  0x7d   :  { %1603 = vmatprep.subr.mxu1 %v281_v51  ;;  %1571 = vmatpush3.msra.mxu0 %v232_v52  ;;  %v275_v12 = vld [vmem:[%s2820_s2 + $0x780] sm:$0xff]  ;;  %v884_v18 = vld [vmem:[%s2821_s3 + $0xf0] sm:$0xff]  ;;  %v869_v19 = vld [vmem:[%s2821_s3 + $0x8] sm:$0xff] }
  0x7e   :  { %1604 = vmatpush3.msra.mxu1 %v265_v53  ;;  %1572 = vmatprep.subr.mxu0 %v247_v54  ;;  %v259_v13 = vld [vmem:[%s2820_s2 + $0x700] sm:$0xff]  ;;  %v852_v21 = vld [vmem:[%s2821_s3 + $0x1b0] sm:$0xff] }
  0x7f   :  { %1605 = vmatprep.subr.mxu1 %v280_v55  ;;  %1573 = vmatpush3.msra.mxu0 %v231_v56  ;;  %v885_v15 = vld [vmem:[%s2821_s3 + $0x100] sm:$0xff]  ;;  %v882_v22 = vld [vmem:[%s2821_s3 + $0xd0] sm:$0xff] }
  0x80   :  { %1606 = vmatpush3.msra.mxu1 %v264_v57  ;;  %1574 = vmatprep.subr.mxu0 %v246_v58  ;;  %v883_v20 = vld [vmem:[%s2821_s3 + $0xe0] sm:$0xff]  ;;  %v880_v26 = vld [vmem:[%s2821_s3 + $0xb0] sm:$0xff] }
  0x81   :  { %1607 = vmatprep.subr.mxu1 %v279_v59  ;;  %1575 = vmatpush3.msra.mxu0 %v230_v60  ;;  %v881_v24 = vld [vmem:[%s2821_s3 + $0xc0] sm:$0xff]  ;;  %v878_v28 = vld [vmem:[%s2821_s3 + $0x90] sm:$0xff] }
  0x82   :  { %1608 = vmatpush3.msra.mxu1 %v263_v61  ;;  %1576 = vmatprep.subr.mxu0 %v245_v62  ;;  %v853_v25 = vld [vmem:[%s2821_s3 + $0x1c0] sm:$0xff]  ;;  %v876_v30 = vld [vmem:[%s2821_s3 + $0x70] sm:$0xff] }
  0x83   :  { %1609 = vmatprep.subr.mxu1 %v278_v63  ;;  %1577 = vmatpush3.msra.mxu0 %v229_v0  ;;  %v879_v27 = vld [vmem:[%s2821_s3 + $0xa0] sm:$0xff]  ;;  %v874_v32 = vld [vmem:[%s2821_s3 + $0x50] sm:$0xff] }
  0x84   :  { %1610 = vmatpush3.msra.mxu1 %v262_v1  ;;  %1578 = vmatprep.subr.mxu0 %v244_v2  ;;  %v877_v29 = vld [vmem:[%s2821_s3 + $0x80] sm:$0xff]  ;;  %v872_v34 = vld [vmem:[%s2821_s3 + $0x30] sm:$0xff] }
  0x85   :  { %1611 = vmatprep.subr.mxu1 %v277_v3  ;;  %1579 = vmatpush3.msra.mxu0 %v228_v4  ;;  %v875_v31 = vld [vmem:[%s2821_s3 + $0x60] sm:$0xff]  ;;  %v870_v36 = vld [vmem:[%s2821_s3 + $0x10] sm:$0xff] }
  0x86   :  { %1612 = vmatpush3.msra.mxu1 %v261_v5  ;;  %1580 = vmatprep.subr.mxu0 %v243_v6  ;;  %v873_v33 = vld [vmem:[%s2821_s3 + $0x40] sm:$0xff]  ;;  %v892_v38 = vld [vmem:[%s2821_s3 + $0x170] sm:$0xff] }
  0x87   :  { %1613 = vmatprep.subr.mxu1 %v276_v7  ;;  %1581 = vmatpush3.msra.mxu0 %v227_v8  ;;  %v871_v35 = vld [vmem:[%s2821_s3 + $0x20] sm:$0xff]  ;;  %v890_v40 = vld [vmem:[%s2821_s3 + $0x150] sm:$0xff] }
  0x88   :  { %776 = vmatprep.mubr.f32.mxu0 %v32_v9  ;;  %1614 = vmatpush3.msra.mxu1 %v260_v10  ;;  %v893_v37 = vld [vmem:[%s2821_s3 + $0x180] sm:$0xff]  ;;  %v983_v42 = vld [vmem:[%s2821_s3 + $0x290] sm:$0xff] }
  0x89   :  { %777 = vmatmul.mubr.f32.vlgmr.msra.gmra.mxu0 %v31_v11  ;;  %1615 = vmatprep.subr.mxu1 %v275_v12  ;;  %v891_v39 = vld [vmem:[%s2821_s3 + $0x160] sm:$0xff]  ;;  %v888_v45 = vld [vmem:[%s2821_s3 + $0x130] sm:$0xff] }
  0x8a   :  { %899 = vmatprep.subr.mxu0 %v1727_v17  ;;  %1616 = vmatpush3.msra.mxu1 %v259_v13  ;;  %v984_v41 = vld [vmem:[%s2821_s3 + $0x2a0] sm:$0xff]  ;;  %v981_v46 = vld [vmem:[%s2821_s3 + $0x270] sm:$0xff] }
  0x8b   :  { %846 = vmatprep.mubr.f32.mxu1 %v34_v14  ;;  %900 = vmatpush1.msra.mxu0 %v885_v15  ;;  %v889_v43 = vld [vmem:[%s2821_s3 + $0x140] sm:$0xff]  ;;  %v886_v48 = vld [vmem:[%s2821_s3 + $0x110] sm:$0xff] }
  0x8c   :  { %847 = vmatmul.mubr.f32.vlgmr.msra.gmra.mxu1 %v33_v16  ;;  %901 = vmatprep.subr.mxu0 %v1727_v17  ;;  %v982_v44 = vld [vmem:[%s2821_s3 + $0x280] sm:$0xff]  ;;  %v979_v52 = vld [vmem:[%s2821_s3 + $0x250] sm:$0xff] }
  0x8d   :  { %902 = vmatpush1.msra.mxu0 %v884_v18  ;;  %1335 = vmatprep.mubr.msk.f32.mxu0 %vm895_vm0, %v869_v19  ;;  %v887_v47 = vld [vmem:[%s2821_s3 + $0x120] sm:$0xff]  ;;  %v977_v54 = vld [vmem:[%s2821_s3 + $0x230] sm:$0xff] }
  0x8e   :  { %903 = vmatprep.subr.mxu0 %v1727_v17  ;;  %1714 = vset.pattern.permute.xlu0 %v1728_v23  ;;  %v972_v49 = vld [vmem:[%s2821_s3 + $0x1a0] sm:$0xff]  ;;  %v975_v56 = vld [vmem:[%s2821_s3 + $0x210] sm:$0xff] }
  0x8f   :  { %904 = vmatpush1.msra.mxu0 %v883_v20  ;;  %857 = vperm.xlu0 %1714, %v852_v21   ;;  %v868_v50 = vld [vmem:[%s2821_s3] sm:$0xff]  ;;  %v973_v58 = vld [vmem:[%s2821_s3 + $0x1f0] sm:$0xff] }
  0x90   :  { %905 = vmatprep.subr.mxu0 %v1727_v17  ;;  %1648 = vmatprep.subr.mxu1 %v1727_v17  ;;  %v980_v51 = vld [vmem:[%s2821_s3 + $0x260] sm:$0xff]  ;;  %v291_v0 = vld [vmem:[%s2821_s3 + $0x1d0] ss:$0 sm:$0xff] }
  0x91   :  { %906 = vmatpush1.msra.mxu0 %v882_v22  ;;  %1649 = vmatpush3.msra.mxu1 %v984_v41  ;;  %v978_v53 = vld [vmem:[%s2821_s3 + $0x240] sm:$0xff] }
  0x92   :  { %907 = vmatprep.subr.mxu0 %v1727_v17  ;;  %1650 = vmatprep.subr.mxu1 %v1727_v17  ;;  %v976_v55 = vld [vmem:[%s2821_s3 + $0x220] sm:$0xff] }
  0x93   :  { %908 = vmatpush1.msra.mxu0 %v881_v24  ;;  %863 = vperm.xlu0 %1714, %v853_v25   ;;  %v974_v57 = vld [vmem:[%s2821_s3 + $0x200] sm:$0xff] }
  0x94   :  { %909 = vmatprep.subr.mxu0 %v1727_v17  ;;  %1651 = vmatpush3.msra.mxu1 %v983_v42  ;;  %v970_v42 = vstv %s2818_s0 }
  0x95   :  { %910 = vmatpush1.msra.mxu0 %v880_v26  ;;  %1652 = vmatprep.subr.mxu1 %v1727_v17 }
  0x96   :  { %911 = vmatprep.subr.mxu0 %v1727_v17  ;;  %1653 = vmatpush3.msra.mxu1 %v982_v44 }
  0x97   :  { %912 = vmatpush1.msra.mxu0 %v879_v27  ;;  %1654 = vmatprep.subr.mxu1 %v1727_v17 }
  0x98   :  { %913 = vmatprep.subr.mxu0 %v1727_v17  ;;  %1655 = vmatpush3.msra.mxu1 %v981_v46 }
  0x99   :  { %914 = vmatpush1.msra.mxu0 %v878_v28  ;;  %1656 = vmatprep.mubr.msk.f32.mxu1 %vm1729_vm2, %v1727_v17  ;;  %v2744_v28 = vld [vmem:[%s2821_s3 + $0x1e0] sm:$0xff] }
  0x9a   :  { %915 = vmatprep.subr.mxu0 %v1727_v17  ;;  %1659 = vmatprep.subr.mxu1 %v1727_v17 }
  0x9b   :  { %916 = vmatpush1.msra.mxu0 %v877_v29  ;;  %1657 = vmatmul.mubr.msk.f32.vlgmr.msra.gmra.mxu1 %vm990_vm1, %v972_v49  ;;  %v1226_v49 = vld [vmem:[%s2821_s3 + $0x350] sm:$0xff] }
  0x9c   :  { %917 = vmatprep.subr.mxu0 %v1727_v17  ;;  %1660 = vmatpush3.msra.mxu1 %v980_v51  ;;  %v1224_v51 = vld [vmem:[%s2821_s3 + $0x330] sm:$0xff] }
  0x9d   :  { %918 = vmatpush1.msra.mxu0 %v876_v30  ;;  %1661 = vmatprep.subr.mxu1 %v1727_v17 }
  0x9e   :  { %919 = vmatprep.subr.mxu0 %v1727_v17  ;;  %1675 = vmatprep.mubr.msk.f32.mxu1 %vm1729_vm2, %v1727_v17 }
  0x9f   :  { %920 = vmatpush1.msra.mxu0 %v875_v31  ;;  %1662 = vmatpush3.msra.mxu1 %v979_v52  ;;  %v1223_v52 = vld [vmem:[%s2821_s3 + $0x320] sm:$0xff] }
  0xa0   :  { %921 = vmatprep.subr.mxu0 %v1727_v17  ;;  %1663 = vmatprep.subr.mxu1 %v1727_v17 }
  0xa1   :  { %922 = vmatpush1.msra.mxu0 %v874_v32  ;;  %1664 = vmatpush3.msra.mxu1 %v978_v53  ;;  %v1222_v53 = vld [vmem:[%s2821_s3 + $0x310] sm:$0xff] }
  0xa2   :  { %923 = vmatprep.subr.mxu0 %v1727_v17  ;;  %1665 = vmatprep.subr.mxu1 %v1727_v17 }
  0xa3   :  { %924 = vmatpush1.msra.mxu0 %v873_v33  ;;  %1666 = vmatpush3.msra.mxu1 %v977_v54  ;;  %v1221_v54 = vld [vmem:[%s2821_s3 + $0x300] sm:$0xff] }
  0xa4   :  { %925 = vmatprep.subr.mxu0 %v1727_v17  ;;  %1667 = vmatprep.subr.mxu1 %v1727_v17 }
  0xa5   :  { %926 = vmatpush1.msra.mxu0 %v872_v34  ;;  %1668 = vmatpush3.msra.mxu1 %v976_v55 }
  0xa6   :  { %927 = vmatprep.subr.mxu0 %v1727_v17  ;;  %1669 = vmatprep.subr.mxu1 %v1727_v17 }
  0xa7   :  { %928 = vmatpush1.msra.mxu0 %v871_v35  ;;  %1670 = vmatpush3.msra.mxu1 %v975_v56  ;;  %v988_v35 = vld [vmem:[%s2821_s3 + $0x2e0] sm:$0xff] }
  0xa8   :  { %929 = vmatprep.subr.mxu0 %v1727_v17  ;;  %1671 = vmatprep.subr.mxu1 %v1727_v17 }
  0xa9   :  { %930 = vmatpush1.msra.mxu0 %v870_v36  ;;  %1672 = vmatpush3.msra.mxu1 %v974_v57  ;;  %v987_v36 = vld [vmem:[%s2821_s3 + $0x2d0] sm:$0xff] }
  0xaa   :  { %947 = vmatprep.subr.mxu0 %v1727_v17  ;;  %1673 = vmatprep.subr.mxu1 %v1727_v17 }
  0xab   :  { %948 = vmatpush2.msra.mxu0 %v893_v37  ;;  %1674 = vmatpush3.msra.mxu1 %v973_v58  ;;  %v986_v37 = vld [vmem:[%s2821_s3 + $0x2c0] sm:$0xff]  ;;  %v989_v58 = vld [vmem:[%s2821_s3 + $0x2f0] ss:$0 sm:$0xff] }
  0xac   :  { %949 = vmatprep.subr.mxu0 %v1727_v17  ;;  %1678 = vmatprep.subr.mxu1 %v1727_v17 }
  0xad   :  { %950 = vmatpush2.msra.mxu0 %v892_v38  ;;  %v985_v38 = vld [vmem:[%s2821_s3 + $0x2b0] sm:$0xff] }
  0xae   :  { %951 = vmatprep.subr.mxu0 %v1727_v17 }
  0xaf   :  { %952 = vmatpush2.msra.mxu0 %v891_v39  ;;  %v894_v39 = vld [vmem:[%s2821_s3 + $0x190] ss:$0 sm:$0xff] }
  0xb0   :  { %953 = vmatprep.subr.mxu0 %v1727_v17 }
  0xb1   :  { %954 = vmatpush2.msra.mxu0 %v890_v40 }
  0xb2   :  { %955 = vmatprep.subr.mxu0 %v1727_v17 }
  0xb3   :  { %956 = vmatpush2.msra.mxu0 %v889_v43 }
  0xb4   :  { %957 = vmatprep.subr.mxu0 %v1727_v17 }
  0xb5   :  { %958 = vmatpush2.msra.mxu0 %v888_v45 }
  0xb6   :  { %959 = vmatprep.subr.mxu0 %v1727_v17 }
  0xb7   :  { %960 = vmatpush2.msra.mxu0 %v887_v47  ;;  %v1228_v47 = vld [vmem:[%s2821_s3 + $0x370] sm:$0xff] }
  0xb8   :  { %961 = vmatprep.subr.mxu0 %v1727_v17 }
  0xb9   :  { %962 = vmatpush2.msra.mxu0 %v886_v48  ;;  %v1227_v48 = vld [vmem:[%s2821_s3 + $0x360] sm:$0xff] }
  0xba   :  { %964 = vmatmul.mubr.f32.vlgmr.msra.gmra.mxu0 %v868_v50  ;;  %v1225_v50 = vld [vmem:[%s2821_s3 + $0x340] sm:$0xff] }
  0xe2   :  { %v1372_v59 = vpop.f32.mrf.mxu0 }
  0xe4   :  { %v1373_v60 = vpop.f32.mrf.mxu0 }
  0xe5   :  { %v1407_v61 = vpop.f32.mrf.mxu1  ;;  %v1374_v63 = vadd.f32 %v1373_v60, %v1372_v59 }
  0xe7   :  { %v1408_v1 = vpop.f32.mrf.mxu1  ;;  %v359_v4 = vadd.f32 %v1374_v63, %v291_v0 }
  0xe8   :  { %v1409_v5 = vadd.f32 %v1408_v1, %v1407_v61 }
  0xea   :  { %v429_v9 = vadd.f32 %v1409_v5, %v359_v4 }
 0x104   :  { %v1442_v62 = vpop.f32.mrf.mxu0 }
 0x106   :  { %v1443_v2 = vpop.f32.mrf.mxu0 }
 0x107   :  { %v1477_v3 = vpop.f32.mrf.mxu1  ;;  %v1444_v7 = vadd.f32 %v1443_v2, %v1442_v62 }
 0x109   :  { %v1478_v8 = vpop.f32.mrf.mxu1  ;;  %v499_v12 = vadd.f32 %v1444_v7, %v429_v9  ;;  %v1304_v7 = vlaneseq }
 0x10a   :  { %v1479_v13 = vadd.f32 %v1478_v8, %v1477_v3  ;;  %v858_v20 = vpop.permute.xlu0 %857  ;;  %v1229_v8 = vld [vmem:[%s2821_s3 + $0x380] ss:$0 sm:$0xff] }
 0x10b   :  { %v1305_v9 = vshrl.u32 %v1304_v7, 7 }
 0x10c   :  { %v569_v16 = vadd.f32 %v1479_v13, %v499_v12 }
 0x10d   :  { %vm1306_vm3 = vcmp.lt.s32.totalorder %v1305_v9, 2 }
 0x10e   :  { %v864_v29 = vpop.permute.xlu0 %863 }
 0x10f   :  { %v866_v32 = vmul.f32 %v864_v29, %v2744_v28 }
 0x127   :  { %v1512_v6 = vpop.f32.mrf.mxu0 }
 0x129   :  { %v1513_v10 = vpop.f32.mrf.mxu0 }
 0x12a   :  { %v1547_v11 = vpop.f32.mrf.mxu1  ;;  %v1514_v14 = vadd.f32 %v1513_v10, %v1512_v6 }
 0x12c   :  { %v1548_v15 = vpop.f32.mrf.mxu1  ;;  %v639_v18 = vadd.f32 %v1514_v14, %v569_v16 }
 0x12d   :  { %v1549_v19 = vadd.f32 %v1548_v15, %v1547_v11 }
 0x12f   :  { %v709_v23 = vadd.f32 %v1549_v19, %v639_v18 }
 0x149   :  { %v1582_v21 = vpop.f32.mrf.mxu0 }
 0x14b   :  { %v1583_v22 = vpop.f32.mrf.mxu0 }
 0x14c   :  { %v1584_v24 = vadd.f32 %v1583_v22, %v1582_v21  ;;  %v1617_v25 = vpop.f32.mrf.mxu1 }
 0x14e   :  { %v779_v26 = vadd.f32 %v1584_v24, %v709_v23  ;;  %v1618_v27 = vpop.f32.mrf.mxu1 }
 0x14f   :  { %v1619_v30 = vadd.f32 %v1618_v27, %v1617_v25 }
 0x151   :  { %v849_v31 = vadd.f32 %v1619_v30, %v779_v26 }
 0x153   :  { %v860_v33 = vmul.f32 %v858_v20, %v849_v31 }
 0x155   :  { %v867_v34 = vadd.f32 %v866_v32, %v860_v33 }
 0x157   :  { %1676 = vmatmul.mubr.msk.f32.vlgmr.msra.gmra.mxu1 %vm895_vm0, %v867_v34 }
 0x158   :  { %1679 = vmatpush3.msra.mxu1 %v988_v35  ;;  %1686 = vmatprep.mubr.msk.f32.mxu1 %vm1729_vm2, %v1727_v17 }
 0x159   :  { %1680 = vmatprep.subr.mxu1 %v1727_v17 }
 0x15a   :  { %1681 = vmatpush3.msra.mxu1 %v987_v36 }
 0x15b   :  { %1682 = vmatprep.subr.mxu1 %v1727_v17  ;;  %v1060_v40 = vpop.f32.mrf.mxu1 }
 0x15c   :  { %1683 = vmatpush3.msra.mxu1 %v986_v37 }
 0x15d   :  { %1684 = vmatprep.subr.mxu1 %v1727_v17  ;;  %v1658_v44 = vpop.f32.mrf.mxu1 }
 0x15e   :  { %1685 = vmatpush3.msra.mxu1 %v985_v38 }
 0x15f   :  { %1689 = vmatprep.subr.mxu1 %v1727_v17 }
 0x17a   :  { %v965_v41 = vpop.f32.mrf.mxu0 }
 0x17b   :  { %v966_v43 = vadd.f32 %v965_v41, %v894_v39 }
 0x17c   :  { %v967_v45 = vpop.f32.mrf.mxu0 }
 0x17d   :  { %v971_v46 = vmul.f32 %v970_v42, %v966_v43 }
 0x17f   :  { %1687 = vmatmul.mubr.msk.f32.vlgmr.msra.gmra.mxu1 %vm990_vm1, %v971_v46 }
 0x180   :  { %1705 = vmatprep.mubr.msk.f32.mxu1 %vm1729_vm2, %v1727_v17  ;;  %1690 = vmatpush3.msra.mxu1 %v1228_v47 }
 0x181   :  { %1691 = vmatprep.subr.mxu1 %v1727_v17 }
 0x182   :  { %1692 = vmatpush3.msra.mxu1 %v1227_v48 }
 0x183   :  { %1693 = vmatprep.subr.mxu1 %v1727_v17 }
 0x184   :  { %1694 = vmatpush3.msra.mxu1 %v1226_v49 }
 0x185   :  { %1695 = vmatprep.subr.mxu1 %v1727_v17 }
 0x186   :  { %1696 = vmatpush3.msra.mxu1 %v1225_v50 }
 0x187   :  { %1697 = vmatprep.subr.mxu1 %v1727_v17 }
 0x188   :  { %1698 = vmatpush3.msra.mxu1 %v1224_v51 }
 0x189   :  { %1699 = vmatprep.subr.mxu1 %v1727_v17 }
 0x18a   :  { %1700 = vmatpush3.msra.mxu1 %v1223_v52 }
 0x18b   :  { %1701 = vmatprep.subr.mxu1 %v1727_v17 }
 0x18c   :  { %1702 = vmatpush3.msra.mxu1 %v1222_v53 }
 0x18d   :  { %1703 = vmatprep.subr.mxu1 %v1727_v17 }
 0x18e   :  { %1704 = vmatpush3.msra.mxu1 %v1221_v54 }
 0x217   :  { %v1133_v55 = vpop.f32.mrf.mxu1 }
 0x218   :  { %v1134_v57 = vadd.f32 %v1133_v55, %v1060_v40 }
 0x219   :  { %v1677_v56 = vpop.f32.mrf.mxu1 }
 0x23f   :  { %v1206_v59 = vpop.f32.mrf.mxu1 }
 0x240   :  { %v1210_v60 = vadd.f32 %v1206_v59, %v1134_v57 }
 0x241   :  { %v1688_v61 = vpop.f32.mrf.mxu1 }
 0x242   :  { %v1211_v62 = vadd.f32 %v1210_v60, %v989_v58 }
 0x244   :  { %v1212_v63 = vmul.f32 %v1211_v62, %v1211_v62 }
 0x246   :  { %v1213_v0 = vmul.f32 %v1212_v63, %v1211_v62 }
 0x248   :  { %v1214_v1 = vmul.f32 0.044715, %v1213_v0 }
 0x24a   :  { %v1215_v17 = vadd.f32 %v1214_v1, %v1211_v62 }
 0x24c   :  { %v1216_v2 = vmul.f32 0.7978846, %v1215_v17 }
 0x24e   :  { %1715 = vtanh.f32 %v1216_v2 }
 0x25b   :  { %v1716_v3 = vpop.eup %1715 }
 0x25c   :  { %v1218_v4 = vadd.f32 1.0, %v1716_v3 }
 0x25e   :  { %v1219_v5 = vmul.f32 0.5, %v1218_v4 }
 0x260   :  { %v1220_v6 = vmul.f32 %v1219_v5, %v1211_v62 }
 0x262   :  { %1706 = vmatmul.mubr.msk.f32.vlgmr.msra.gmra.mxu1 %vm895_vm0, %v1220_v6 }
 0x322   :  { %v1299_v10 = vpop.f32.mrf.mxu1 }
 0x323   :  { %v1300_v11 = vadd.f32 %v1299_v10, %v1229_v8 }
 0x324   :  { %v1707_v12 = vpop.f32.mrf.mxu1 }
 0x325   :  { %v1303_v13 = vsub.f32 %v1300_v11, %v2744_v28 }
 0x327   :  { %v1307_v14 = vsel %vm1306_vm3, %v1303_v13, 0.0 }
 0x328   :  { %v1308_v15 = vmul.f32 %v1307_v14, %v1307_v14 }
 0x32a   :  { %v1309_v16 = vsel %vm895_vm0, %v1308_v15, 0.0 }
 0x32b   :  { %1310 = vadd.xlane.f32.xlu1 %v1309_v16 }
 0x3b4   :  { %v1311_v18 = vpop.xlane.xlu1 %1310 }
 0x3b5   :  { %v1312_v19 = vrot.slane %v1311_v18, 4 }
 0x3b7   :  { %v1313_v20 = vadd.f32 %v1312_v19, %v1311_v18 }
 0x3b9   :  { %v1314_v21 = vrot.slane %v1313_v20, 2 }
 0x3bb   :  { %v1315_v22 = vadd.f32 %v1314_v21, %v1313_v20 }
 0x3bd   :  { %v1316_v23 = vrot.slane %v1315_v22, 1 }
 0x3bf   :  { %v1317_v24 = vadd.f32 %v1316_v23, %v1315_v22 }
 0x3c1   :  { %1708 = vpush %v1317_v24 }
 0x3f2   :  { %s1709_s3 = spop %1708 }
 0x3f3   :  { %s1319_s17 = smul.f32 0.0078125, %s1709_s3 }
 0x3f5   :  { %1321 = sst [smem:[#allocation3]] %s1319_s17 }
 0x3f6   :  { %1329 = dma.smem_to_hbm %s1730_s18, 16, %s2822_s4, [#allocation4]  }
 0x3f7   :  { %1725 = dma.done.wait [#allocation4], 16  }
 0x3f8   :  { %1726 = vsyncadd [#allocation4], 4294967280 }
 0x3f9   :  { %1333 = sfence }
 0x3fa   :  { %1334 = vsyncpa [#allocation4], 1 }

</bundles_post_ra>
